<compile_context>
chip_gen: v7x
topology: tpu7x:2x2x1
jax: 0.10.0
libtpu: 0.0.40
codegen_flags: <defaults>
</compile_context>

<pallas_src>
import functools

import jax
import jax.numpy as jnp
from jax.experimental import pallas as pl
from jax.experimental.pallas import tpu as pltpu

_LANE = 128


def _round_up(x, m):
    return ((x + m - 1) // m) * m


def _targetnet_kernel(x_ref, w1_ref, b1_ref, w2_ref, b2_ref, w3_ref, b3_ref,
                      o_ref, *, c_chunk, f_chunk):
    """One grid step == one block of bb images (batch sits on lanes).

    Block shapes (bb = lane-block of images):
      x:  (C, bb)       w1: (F1, C, bb)   b1: (F1, bb)
                        w2: (F2, F1, bb)  b2: (F2, bb)
                        w3: (F2, bb)      b3: (1, bb)     out: (1, bb)
    All contractions reduce over a sublane axis (VPU adds + short intra-vreg
    reduce); weights are loaded bf16 and upcast per chunk.
    """
    f32 = jnp.float32
    C = x_ref.shape[0]
    F1 = b1_ref.shape[0]

    h = jax.nn.sigmoid(x_ref[...])                      # (C, bb) f32

    # layer 1: h1[f,b] = sum_c w1[f,c,b] * h[c,b] + b1[f,b]
    h1 = b1_ref[...]                                    # (F1, bb) accumulator
    for c0 in range(0, C, c_chunk):
        c1 = min(c0 + c_chunk, C)
        w_c = w1_ref[:, c0:c1, :].astype(f32)           # (F1, ch, bb)
        h_c = h[c0:c1, :][None, :, :]                   # (1,  ch, bb)
        h1 = h1 + jnp.sum(w_c * h_c, axis=1)            # sublane reduce
    h1 = jax.nn.sigmoid(h1)

    # layer 2: h2[f,b] = sum_k w2[f,k,b] * h1[k,b] + b2[f,b]
    h2 = b2_ref[...]                                    # (F2, bb)
    for f0 in range(0, F1, f_chunk):
        f1 = min(f0 + f_chunk, F1)
        w_c = w2_ref[:, f0:f1, :].astype(f32)           # (F2, ch, bb)
        h_c = h1[f0:f1, :][None, :, :]                  # (1,  ch, bb)
        h2 = h2 + jnp.sum(w_c * h_c, axis=1)
    h2 = jax.nn.sigmoid(h2)

    # layer 3 (OUT == 1): lane-dense (1, bb) store
    o_ref[...] = (jnp.sum(w3_ref[...].astype(f32) * h2, axis=0, keepdims=True)
                  + b3_ref[...])


def targetnet_forward(x_nchw, paras, block_b=None):
    """x_nchw: (B, C, 1, 1) f32; paras: PyTorch-shaped parameter dict."""
    B, C, H, W = x_nchw.shape
    assert H == 1 and W == 1, "kernel specialized to the HW==1 TargetNet case"
    F1 = paras["target_fc1w"].shape[1]
    F2 = paras["target_fc2w"].shape[1]
    OUT = paras["target_fc3w"].shape[1]
    assert OUT == 1, "kernel specialized to the OUT==1 TargetNet head"

    bf16, f32 = jnp.bfloat16, jnp.float32

    # ---- batch block size (lanes): auto-size to ~8 MiB of operands/step ----
    if block_b is None:
        per_img = (2 * (C * F1 + F1 * F2 + F2)          # bf16 weights
                   + 4 * (C + F1 + F2 + 2))             # f32 x / biases / out
        block_b = max(_LANE,
                      min(1024, ((8 << 20) // max(per_img, 1)) // _LANE * _LANE))
    bb = min(_round_up(B, _LANE), _round_up(block_b, _LANE))
    Bp = _round_up(B, bb)
    grid = (Bp // bb,)

    # ---- preprocessing: transpose-to-batch-last + bf16 cast + pad, fused ----
    def prep(a, perm, dtype):
        a = jnp.transpose(a, perm).astype(dtype)
        if a.shape[-1] != Bp:
            a = jnp.pad(a, [(0, 0)] * (a.ndim - 1) + [(0, Bp - a.shape[-1])])
        return a

    xT = prep(x_nchw.reshape(B, C), (1, 0), f32)                         # (C, Bp)
    w1 = prep(paras["target_fc1w"].reshape(B, F1, C), (1, 2, 0), bf16)   # (F1,C,Bp)
    b1 = prep(paras["target_fc1b"], (1, 0), f32)                         # (F1, Bp)
    w2 = prep(paras["target_fc2w"].reshape(B, F2, F1), (1, 2, 0), bf16)  # (F2,F1,Bp)
    b2 = prep(paras["target_fc2b"], (1, 0), f32)                         # (F2, Bp)
    w3 = prep(paras["target_fc3w"].reshape(B, F2), (1, 0), bf16)         # (F2, Bp)
    b3 = prep(paras["target_fc3b"].reshape(B, OUT), (1, 0), f32)         # (1,  Bp)

    # ---- explicit VMEM budget from the padded per-step footprint -----------
    Cp, F1p, F2p = (_round_up(d, 8) for d in (C, F1, F2))
    tile = (Cp * bb * 4 + F1 * Cp * bb * 2 + F1p * bb * 4
            + F2 * F1p * bb * 2 + F2p * bb * 4 + F2p * bb * 2 + 8 * bb * 4 * 2)
    interm = 2 * bb * 4 * (F1 * min(64, Cp) + F2 * min(64, F1p))
    vmem_limit = int(min(128 << 20, max(32 << 20, 2 * tile + interm + (4 << 20))))

    kernel = functools.partial(_targetnet_kernel, c_chunk=64, f_chunk=64)
    out = pl.pallas_call(
        kernel,
        out_shape=jax.ShapeDtypeStruct((1, Bp), f32),
        grid_spec=pltpu.PrefetchScalarGridSpec(
            num_scalar_prefetch=0,
            grid=grid,
            in_specs=[
                pl.BlockSpec((C, bb), lambda g: (0, g)),          # x
                pl.BlockSpec((F1, C, bb), lambda g: (0, 0, g)),   # w1
                pl.BlockSpec((F1, bb), lambda g: (0, g)),         # b1
                pl.BlockSpec((F2, F1, bb), lambda g: (0, 0, g)),  # w2
                pl.BlockSpec((F2, bb), lambda g: (0, g)),         # b2
                pl.BlockSpec((F2, bb), lambda g: (0, g)),         # w3
                pl.BlockSpec((1, bb), lambda g: (0, g)),          # b3
            ],
            out_specs=pl.BlockSpec((1, bb), lambda g: (0, g)),    # lane-dense
        ),
        compiler_params=pltpu.CompilerParams(
            dimension_semantics=("parallel",),
            vmem_limit_bytes=vmem_limit),
    )(xT, w1, b1, w2, b2, w3, b3)

    # (1, Bp) -> (B, OUT); matches PyTorch .squeeze(2).squeeze(2) result shape.
    return out[0, :B].reshape(B, OUT)


def _reference_forward(x_nchw, paras):
    """Pure-JAX reference mirroring the PyTorch grouped-conv formulation."""
    hi = jax.lax.Precision.HIGHEST

    def fc(x, w, b):  # x: (B,C,H,W), w: (B,O,C,1,1), b: (B,O)
        y = jnp.einsum("bchw,boc->bohw", x, w[..., 0, 0], precision=hi)
        return y + b[:, :, None, None]

    q = jax.nn.sigmoid(x_nchw)
    q = jax.nn.sigmoid(fc(q, paras["target_fc1w"], paras["target_fc1b"]))
    q = jax.nn.sigmoid(fc(q, paras["target_fc2w"], paras["target_fc2b"]))
    q = fc(q, paras["target_fc3w"], paras["target_fc3b"])
    return q[:, :, 0, 0]


if __name__ == "__main__":
    # Small shapes consistent with the module: per-image FC weights from the
    # hyper network, input feature vector of shape (B, C_in, 1, 1).
    B, C_IN, F1, F2, OUT = 2, 32, 16, 16, 1
    H = W = 1

    key = jax.random.PRNGKey(0)
    ks = jax.random.split(key, 7)

    x = jax.random.normal(ks[0], (B, C_IN, H, W), dtype=jnp.float32)
    paras = {
        "target_fc1w": 0.1 * jax.random.normal(ks[1], (B, F1, C_IN, 1, 1), jnp.float32),
        "target_fc1b": 0.1 * jax.random.normal(ks[2], (B, F1), jnp.float32),
        "target_fc2w": 0.1 * jax.random.normal(ks[3], (B, F2, F1, 1, 1), jnp.float32),
        "target_fc2b": 0.1 * jax.random.normal(ks[4], (B, F2), jnp.float32),
        "target_fc3w": 0.1 * jax.random.normal(ks[5], (B, OUT, F2, 1, 1), jnp.float32),
        "target_fc3b": 0.1 * jax.random.normal(ks[6], (B, OUT), jnp.float32),
    }

    out = targetnet_forward(x, paras)
    out = jax.block_until_ready(out)
    assert out.shape == (B, OUT), f"unexpected output shape {out.shape}"

    # Tight check: reference with the same bf16-rounded weights (f32 accum).
    paras_bf16 = {k: (v.astype(jnp.bfloat16).astype(jnp.float32)
                      if k.endswith("w") else v) for k, v in paras.items()}
    ref_bf16 = _reference_forward(x, paras_bf16)
    assert jnp.allclose(out, ref_bf16, atol=1e-4, rtol=1e-4), \
        "mismatch vs bf16-weight reference"

    # Loose check: full-precision reference (bf16 weight quantization error).
    ref_f32 = _reference_forward(x, paras)
    assert jnp.allclose(out, ref_f32, atol=1e-2, rtol=1e-2), \
        "mismatch vs f32 reference"

    print("KERNEL_OK")
</pallas_src>

<mosaic_0001>
module attributes {stable_mosaic.version = 11 : i64} {
  func.func @_targetnet_kernel(%arg0: i32, %arg1: memref<32x128xf32, #tpu.memory_space<vmem>>, %arg2: memref<16x32x128xbf16, #tpu.memory_space<vmem>>, %arg3: memref<16x128xf32, #tpu.memory_space<vmem>>, %arg4: memref<16x16x128xbf16, #tpu.memory_space<vmem>>, %arg5: memref<16x128xf32, #tpu.memory_space<vmem>>, %arg6: memref<16x128xbf16, #tpu.memory_space<vmem>>, %arg7: memref<1x128xf32, #tpu.memory_space<vmem>>, %arg8: memref<1x128xf32, #tpu.memory_space<vmem>>) attributes {dimension_semantics = [#tpu.dimension_semantics<parallel>], iteration_bounds = array<i64: 1>, scalar_prefetch = 0 : i64, scratch_operands = 0 : i64, tpu.core_type = #tpu.core_type<tc>, window_params = [{transform_indices = @transform_0, window_bounds = array<i64: 32, 128>}, {transform_indices = @transform_1, window_bounds = array<i64: 16, 32, 128>}, {transform_indices = @transform_2, window_bounds = array<i64: 16, 128>}, {transform_indices = @transform_3, window_bounds = array<i64: 16, 16, 128>}, {transform_indices = @transform_4, window_bounds = array<i64: 16, 128>}, {transform_indices = @transform_5, window_bounds = array<i64: 16, 128>}, {transform_indices = @transform_6, window_bounds = array<i64: 1, 128>}, {transform_indices = @transform_7, window_bounds = array<i64: 1, 128>}]} {
    %c0 = arith.constant 0 : index
    %c0_0 = arith.constant 0 : index
    %0 = vector.load %arg1[%c0, %c0_0] : memref<32x128xf32, #tpu.memory_space<vmem>>, vector<32x128xf32>
    %1 = arith.negf %0 : vector<32x128xf32>
    %2 = math.exp %1 : vector<32x128xf32>
    %cst = arith.constant 1.000000e+00 : f32
    %3 = vector.broadcast %cst : f32 to vector<32x128xf32>
    %4 = arith.addf %3, %2 : vector<32x128xf32>
    %5 = arith.divf %3, %4 : vector<32x128xf32>
    %c0_1 = arith.constant 0 : index
    %c0_2 = arith.constant 0 : index
    %6 = vector.load %arg3[%c0_1, %c0_2] : memref<16x128xf32, #tpu.memory_space<vmem>>, vector<16x128xf32>
    %c0_3 = arith.constant 0 : index
    %c0_4 = arith.constant 0 : index
    %c0_5 = arith.constant 0 : index
    %7 = vector.load %arg2[%c0_3, %c0_4, %c0_5] : memref<16x32x128xbf16, #tpu.memory_space<vmem>>, vector<16x32x128xbf16>
    %8 = arith.extf %7 : vector<16x32x128xbf16> to vector<16x32x128xf32>
    %9 = vector.shape_cast %5 : vector<32x128xf32> to vector<1x32x128xf32>
    %10 = vector.broadcast %9 : vector<1x32x128xf32> to vector<16x32x128xf32>
    %11 = arith.mulf %8, %10 : vector<16x32x128xf32>
    %cst_6 = arith.constant dense<0.000000e+00> : vector<16x128xf32>
    %12 = vector.multi_reduction <add>, %11, %cst_6 [1] : vector<16x32x128xf32> to vector<16x128xf32>
    %13 = arith.addf %6, %12 : vector<16x128xf32>
    %14 = arith.negf %13 : vector<16x128xf32>
    %15 = math.exp %14 : vector<16x128xf32>
    %cst_7 = arith.constant 1.000000e+00 : f32
    %16 = vector.broadcast %cst_7 : f32 to vector<16x128xf32>
    %17 = arith.addf %16, %15 : vector<16x128xf32>
    %18 = arith.divf %16, %17 : vector<16x128xf32>
    %c0_8 = arith.constant 0 : index
    %c0_9 = arith.constant 0 : index
    %19 = vector.load %arg5[%c0_8, %c0_9] : memref<16x128xf32, #tpu.memory_space<vmem>>, vector<16x128xf32>
    %c0_10 = arith.constant 0 : index
    %c0_11 = arith.constant 0 : index
    %c0_12 = arith.constant 0 : index
    %20 = vector.load %arg4[%c0_10, %c0_11, %c0_12] : memref<16x16x128xbf16, #tpu.memory_space<vmem>>, vector<16x16x128xbf16>
    %21 = arith.extf %20 : vector<16x16x128xbf16> to vector<16x16x128xf32>
    %22 = vector.shape_cast %18 : vector<16x128xf32> to vector<1x16x128xf32>
    %23 = vector.broadcast %22 : vector<1x16x128xf32> to vector<16x16x128xf32>
    %24 = arith.mulf %21, %23 : vector<16x16x128xf32>
    %cst_13 = arith.constant dense<0.000000e+00> : vector<16x128xf32>
    %25 = vector.multi_reduction <add>, %24, %cst_13 [1] : vector<16x16x128xf32> to vector<16x128xf32>
    %26 = arith.addf %19, %25 : vector<16x128xf32>
    %27 = arith.negf %26 : vector<16x128xf32>
    %28 = math.exp %27 : vector<16x128xf32>
    %cst_14 = arith.constant 1.000000e+00 : f32
    %29 = vector.broadcast %cst_14 : f32 to vector<16x128xf32>
    %30 = arith.addf %29, %28 : vector<16x128xf32>
    %31 = arith.divf %29, %30 : vector<16x128xf32>
    %c0_15 = arith.constant 0 : index
    %c0_16 = arith.constant 0 : index
    %32 = vector.load %arg6[%c0_15, %c0_16] : memref<16x128xbf16, #tpu.memory_space<vmem>>, vector<16x128xbf16>
    %33 = arith.extf %32 : vector<16x128xbf16> to vector<16x128xf32>
    %34 = arith.mulf %33, %31 : vector<16x128xf32>
    %cst_17 = arith.constant dense<0.000000e+00> : vector<128xf32>
    %35 = vector.multi_reduction <add>, %34, %cst_17 [0] : vector<16x128xf32> to vector<128xf32>
    %36 = vector.shape_cast %35 : vector<128xf32> to vector<1x128xf32>
    %c0_18 = arith.constant 0 : index
    %c0_19 = arith.constant 0 : index
    %37 = vector.load %arg7[%c0_18, %c0_19] : memref<1x128xf32, #tpu.memory_space<vmem>>, vector<1x128xf32>
    %38 = arith.addf %36, %37 : vector<1x128xf32>
    %c0_20 = arith.constant 0 : index
    %c0_21 = arith.constant 0 : index
    %39 = vector.load %arg8[%c0_20, %c0_21] : memref<1x128xf32, #tpu.memory_space<vmem>>, vector<1x128xf32>
    tpu.vector_store %arg8[%c0_20, %c0_21], %38 {strides = array<i32>} : memref<1x128xf32, #tpu.memory_space<vmem>>, vector<1x128xf32>,
    return
  }
  func.func @transform_0(%arg0: i32) -> (i32, i32) {
    %c0_i32 = arith.constant 0 : i32
    %c0_i32_0 = arith.constant 0 : i32
    return %c0_i32, %arg0 : i32, i32
  }
  func.func @transform_1(%arg0: i32) -> (i32, i32, i32) {
    %c0_i32 = arith.constant 0 : i32
    %c0_i32_0 = arith.constant 0 : i32
    %c0_i32_1 = arith.constant 0 : i32
    return %c0_i32, %c0_i32_0, %arg0 : i32, i32, i32
  }
  func.func @transform_2(%arg0: i32) -> (i32, i32) {
    %c0_i32 = arith.constant 0 : i32
    %c0_i32_0 = arith.constant 0 : i32
    return %c0_i32, %arg0 : i32, i32
  }
  func.func @transform_3(%arg0: i32) -> (i32, i32, i32) {
    %c0_i32 = arith.constant 0 : i32
    %c0_i32_0 = arith.constant 0 : i32
    %c0_i32_1 = arith.constant 0 : i32
    return %c0_i32, %c0_i32_0, %arg0 : i32, i32, i32
  }
  func.func @transform_4(%arg0: i32) -> (i32, i32) {
    %c0_i32 = arith.constant 0 : i32
    %c0_i32_0 = arith.constant 0 : i32
    return %c0_i32, %arg0 : i32, i32
  }
  func.func @transform_5(%arg0: i32) -> (i32, i32) {
    %c0_i32 = arith.constant 0 : i32
    %c0_i32_0 = arith.constant 0 : i32
    return %c0_i32, %arg0 : i32, i32
  }
  func.func @transform_6(%arg0: i32) -> (i32, i32) {
    %c0_i32 = arith.constant 0 : i32
    %c0_i32_0 = arith.constant 0 : i32
    return %c0_i32, %arg0 : i32, i32
  }
  func.func @transform_7(%arg0: i32) -> (i32, i32) {
    %c0_i32 = arith.constant 0 : i32
    %c0_i32_0 = arith.constant 0 : i32
    return %c0_i32, %arg0 : i32, i32
  }
}

</mosaic_0001>

<bundles_post_ra>
// kernel: tpu_custom_call.1
= control target key start
LH: loop header
LB: loop body
LE: loop exit
PB: predicated region body
PF: predicated region fallthrough
CT: control target
= control target key end

     0   :  { %12 = vsyncpa [#allocation3], 0  ;;  %s1971_s0 = inlined_call_operand.hbm [shape: f32[32,128], index: 0, kind: input, shape index: {}]   ;;  %s1972_s1 = inlined_call_operand.hbm [shape: bf16[16,32,128], index: 1, kind: input, shape index: {}]   ;;  %s1973_s2 = inlined_call_operand.hbm [shape: f32[16,128], index: 2, kind: input, shape index: {}]   ;;  %s1974_s3 = inlined_call_operand.hbm [shape: bf16[16,16,128], index: 3, kind: input, shape index: {}]   ;;  %s1975_s4 = inlined_call_operand.hbm [shape: f32[16,128], index: 4, kind: input, shape index: {}]   ;;  %s1976_s5 = inlined_call_operand.vmem [shape: bf16[16,128], index: 5, kind: input, shape index: {}]   ;;  %s1977_s6 = inlined_call_operand.vmem [shape: f32[1,128], index: 6, kind: input, shape index: {}]   ;;  %s1978_s7 = inlined_call_operand.hbm [shape: f32[1,128], index: 7, kind: output, shape index: {}]  }
   0x1   :  { %13 = vsyncpa [#allocation6], 0 }
   0x2   :  { %14 = vsyncpa [#allocation9], 0 }
   0x3   :  { %15 = vsyncpa [#allocation4], 0  ;;  %s1235_s24 = smov [#allocation5]   ;;  %s1095_s28 = scalar_lea.hbm %s1972_s1, 4096 }
   0x4   :  { %s33_s25 = sshll.u32 %s1235_s24, 4  ;;  %p1096_p0 = scmp.ne.s32.totalorder %s1972_s1, %s1095_s28  ;;  %s34_s25 = int_to_ptr.vmem [resolvable:$true] %s33_s25 }
   0x5   :  { %p1099_p1 = scmp.lt.u32.totalorder %s1095_s28, %s1972_s1 }
   0x7   :  { %p1101_p2 = pnand %p1099_p1, %p1096_p0 }
   0x9   :  { %1104 = shalt.err (!%p1101_p2)
}
   0xa   :  { %s1105_s10 = scalar_lea.vmem %s34_s25, 4096  ;;  %p1110_p4 = scmp.lt.s32.totalorder %s34_s25, %s34_s25 }
   0xb   :  { %p1106_p3 = scmp.ne.s32.totalorder %s34_s25, %s1105_s10  ;;  %p1111_p5 = scmp.lt.s32.totalorder %s1105_s10, %s1105_s10 }
   0xd   :  { %p1112_p6 = por %p1111_p5, %p1110_p4 }
   0xf   :  { %p1113_p7 = pnand %p1112_p6, %p1106_p3 }
  0x11   :  { %1116 = shalt.err (!%p1113_p7)
}
  0x12   :  { %s1236_s11 = smov 64   ;;  %s1237_s12 = smov 4  }
  0x13   :  { %39 = dma.hbm_to_vmem [thread:$0]  %s1972_s1, 4096, %s34_s25, [#allocation6], %s1236_s11, %s1236_s11, %s1237_s12  }
  0x14   :  { %s1238_s15 = smov [#allocation8]   ;;  %s1239_s17 = smov [#allocation2]  }
  0x15   :  { %s57_s16 = sshll.u32 %s1238_s15, 4  ;;  %s21_s18 = sshll.u32 %s1239_s17, 4  ;;  %s58_s16 = int_to_ptr.vmem [resolvable:$true] %s57_s16  ;;  %s22_s18 = int_to_ptr.vmem [resolvable:$true] %s21_s18 }
  0x16   :  { %s1117_s21 = scalar_lea.hbm %s1974_s3, 2048 }
  0x17   :  { %p1118_p8 = scmp.ne.s32.totalorder %s1974_s3, %s1117_s21  ;;  %p1121_p9 = scmp.lt.u32.totalorder %s1117_s21, %s1974_s3 }
  0x19   :  { %p1123_p10 = pnand %p1121_p9, %p1118_p8 }
  0x1b   :  { %1126 = shalt.err (!%p1123_p10)
}
  0x1c   :  { %s1127_s1 = scalar_lea.vmem %s58_s16, 2048  ;;  %p1132_p12 = scmp.lt.s32.totalorder %s58_s16, %s58_s16 }
  0x1d   :  { %p1128_p11 = scmp.ne.s32.totalorder %s58_s16, %s1127_s1  ;;  %p1133_p13 = scmp.lt.s32.totalorder %s1127_s1, %s1127_s1 }
  0x1f   :  { %p1134_p0 = por %p1133_p13, %p1132_p12 }
  0x21   :  { %p1135_p1 = pnand %p1134_p0, %p1128_p11 }
  0x23   :  { %1138 = shalt.err (!%p1135_p1)
}
  0x24   :  { %63 = dma.hbm_to_vmem [thread:$0]  %s1974_s3, 2048, %s58_s16, [#allocation9], %s1236_s11, %s1236_s11, %s1237_s12  }
  0x25   :  { %s1139_s30 = scalar_lea.hbm %s1971_s0, 512 }
  0x26   :  { %p1140_p2 = scmp.ne.s32.totalorder %s1971_s0, %s1139_s30  ;;  %p1143_p3 = scmp.lt.u32.totalorder %s1139_s30, %s1971_s0 }
  0x28   :  { %p1145_p4 = pnand %p1143_p3, %p1140_p2 }
  0x2a   :  { %1148 = shalt.err (!%p1145_p4)
}
  0x2b   :  { %s1149_s14 = scalar_lea.vmem %s22_s18, 512  ;;  %p1154_p6 = scmp.lt.s32.totalorder %s22_s18, %s22_s18 }
  0x2c   :  { %p1150_p5 = scmp.ne.s32.totalorder %s22_s18, %s1149_s14  ;;  %p1155_p7 = scmp.lt.s32.totalorder %s1149_s14, %s1149_s14 }
  0x2e   :  { %p1156_p8 = por %p1155_p7, %p1154_p6 }
  0x30   :  { %p1157_p9 = pnand %p1156_p8, %p1150_p5 }
  0x32   :  { %1160 = shalt.err (!%p1157_p9)
}
  0x33   :  { %s1240_s3 = smov 128   ;;  %s1241_s11 = smov 8  }
  0x34   :  { %27 = dma.hbm_to_vmem [thread:$0]  %s1971_s0, 512, %s22_s18, [#allocation3], %s1240_s3, %s1240_s3, %s1241_s11  }
  0x35   :  { %s1242_s16 = smov [#allocation7]   ;;  %s1243_s19 = smov [#allocation10]  }
  0x36   :  { %s45_s17 = sshll.u32 %s1242_s16, 4  ;;  %s69_s20 = sshll.u32 %s1243_s19, 4  ;;  %s46_s17 = int_to_ptr.vmem [resolvable:$true] %s45_s17  ;;  %s70_s20 = int_to_ptr.vmem [resolvable:$true] %s69_s20 }
  0x37   :  { %s1161_s23 = scalar_lea.hbm %s1973_s2, 256 }
  0x38   :  { %p1162_p10 = scmp.ne.s32.totalorder %s1973_s2, %s1161_s23  ;;  %p1165_p11 = scmp.lt.u32.totalorder %s1161_s23, %s1973_s2 }
  0x3a   :  { %p1167_p12 = pnand %p1165_p11, %p1162_p10 }
  0x3c   :  { %1170 = shalt.err (!%p1167_p12)
}
  0x3d   :  { %s1171_s0 = scalar_lea.vmem %s46_s17, 256  ;;  %p1176_p0 = scmp.lt.s32.totalorder %s46_s17, %s46_s17 }
  0x3e   :  { %p1172_p13 = scmp.ne.s32.totalorder %s46_s17, %s1171_s0  ;;  %p1177_p1 = scmp.lt.s32.totalorder %s1171_s0, %s1171_s0 }
  0x40   :  { %p1178_p2 = por %p1177_p1, %p1176_p0 }
  0x42   :  { %p1179_p3 = pnand %p1178_p2, %p1172_p13 }
  0x44   :  { %1182 = shalt.err (!%p1179_p3)
}
  0x45   :  { %51 = dma.hbm_to_vmem [thread:$0]  %s1973_s2, 256, %s46_s17, [#allocation6], %s1240_s3, %s1240_s3, %s1241_s11  }
  0x46   :  { %s1183_s30 = scalar_lea.hbm %s1975_s4, 256 }
  0x47   :  { %p1184_p4 = scmp.ne.s32.totalorder %s1975_s4, %s1183_s30  ;;  %p1187_p5 = scmp.lt.u32.totalorder %s1183_s30, %s1975_s4 }
  0x49   :  { %p1189_p6 = pnand %p1187_p5, %p1184_p4 }
  0x4b   :  { %1192 = shalt.err (!%p1189_p6)
}
  0x4c   :  { %s1193_s14 = scalar_lea.vmem %s70_s20, 256  ;;  %p1198_p8 = scmp.lt.s32.totalorder %s70_s20, %s70_s20 }
  0x4d   :  { %p1194_p7 = scmp.ne.s32.totalorder %s70_s20, %s1193_s14  ;;  %p1199_p9 = scmp.lt.s32.totalorder %s1193_s14, %s1193_s14 }
  0x4f   :  { %p1200_p10 = por %p1199_p9, %p1198_p8 }
  0x51   :  { %p1201_p11 = pnand %p1200_p10, %p1194_p7 }
  0x53   :  { %1204 = shalt.err (!%p1201_p11)
}
  0x54   :  { %75 = dma.hbm_to_vmem [thread:$0]  %s1975_s4, 256, %s70_s20, [#allocation9], %s1240_s3, %s1240_s3, %s1241_s11  }
  0x55   :  { %1227 = dma.done.wait [#allocation3], 512  }
  0x56   :  { %1228 = vsyncadd [#allocation3], 4294966784 }
  0x57   :  { %1229 = dma.done.wait [#allocation6], 4352  }
  0x58   :  { %1230 = vsyncadd [#allocation6], 4294962944 }
  0x59   :  { %1231 = dma.done.wait [#allocation9], 2304  }
  0x5a   :  { %1232 = vsyncadd [#allocation9], 4294964992  ;;  %v95_v0 = vld [vmem:[#allocation2] sm:$0xff]  ;;  %v96_v1 = vld [vmem:[#allocation2 + $0x8] sm:$0xff]  ;;  %vm477_vm0 = vcmask 1041409   ;;  %vm479_vm1 = vcmask 1042434  }
  0x5b   :  { %v97_v2 = vld [vmem:[#allocation2 + $0x10] sm:$0xff]  ;;  %v98_v3 = vld [vmem:[#allocation2 + $0x18] sm:$0xff]  ;;  %v803_v4 = vmul.f32 -1.442695, %v95_v0  ;;  %v804_v5 = vmul.f32 -1.442695, %v96_v1 }
  0x5c   :  { %v805_v6 = vmul.f32 -1.442695, %v97_v2  ;;  %v806_v7 = vmul.f32 -1.442695, %v98_v3  ;;  %v1354_v8 = vld [vmem:[#allocation5] sm:$0xff]   ;;  %v1356_v9 = vld [vmem:[#allocation5 + $0x8] sm:$0xff]  }
  0x5d   :  { %1063 = vpow2.f32 %v803_v4  ;;  %v1358_v10 = vld [vmem:[#allocation5 + $0x10] sm:$0xff]   ;;  %v1360_v11 = vld [vmem:[#allocation5 + $0x18] sm:$0xff]   ;;  %v1362_v12 = vld [vmem:[#allocation5 + $0x20] sm:$0xff]   ;;  %v813_v14 = vunpack.c.l.bf16 %v1354_v8  ;;  %v814_v15 = vunpack.c.h.bf16 %v1354_v8  ;;  %v817_v16 = vunpack.c.l.bf16 %v1356_v9  ;;  %s1244_s16 = smov [#allocation11]  }
  0x5e   :  { %1065 = vpow2.f32 %v804_v5  ;;  %v1364_v13 = vld [vmem:[#allocation5 + $0x28] sm:$0xff]   ;;  %v818_v17 = vunpack.c.h.bf16 %v1356_v9  ;;  %v1370_v18 = vld [vmem:[#allocation5 + $0x30] sm:$0xff]   ;;  %v1372_v19 = vld [vmem:[#allocation5 + $0x38] sm:$0xff]   ;;  %v821_v20 = vunpack.c.l.bf16 %v1358_v10  ;;  %v822_v21 = vunpack.c.h.bf16 %v1358_v10  ;;  %s792_s17 = sshll.u32 %s1244_s16, 4  ;;  %s793_s17 = int_to_ptr.vmem [resolvable:$true] %s792_s17 }
  0x5f   :  { %1067 = vpow2.f32 %v805_v6  ;;  %v825_v22 = vunpack.c.l.bf16 %v1360_v11  ;;  %v826_v23 = vunpack.c.h.bf16 %v1360_v11  ;;  %v1378_v24 = vld [vmem:[#allocation5 + $0x40] sm:$0xff]   ;;  %v1380_v25 = vld [vmem:[#allocation5 + $0x48] sm:$0xff]   ;;  %v829_v26 = vunpack.c.l.bf16 %v1362_v12  ;;  %v1386_v30 = vld [vmem:[#allocation5 + $0x50] sm:$0xff]   ;;  %s1209_s19 = scalar_lea.vmem %s793_s17, 32  ;;  %p1210_p13 = scmp.lt.s32.totalorder %s793_s17, %s793_s17 }
  0x60   :  { %1069 = vpow2.f32 %v806_v7  ;;  %v830_v27 = vunpack.c.h.bf16 %v1362_v12  ;;  %v833_v28 = vunpack.c.l.bf16 %v1364_v13  ;;  %v834_v29 = vunpack.c.h.bf16 %v1364_v13  ;;  %v1392_v36 = vld [vmem:[#allocation5 + $0x58] sm:$0xff]   ;;  %v1397_v42 = vld [vmem:[#allocation5 + $0x60] sm:$0xff]   ;;  %v1402_v48 = vld [vmem:[#allocation5 + $0x68] sm:$0xff]  }
  0x61   :  { %v837_v32 = vunpack.c.l.bf16 %v1370_v18  ;;  %v838_v33 = vunpack.c.h.bf16 %v1370_v18  ;;  %v841_v34 = vunpack.c.l.bf16 %v1372_v19  ;;  %v842_v35 = vunpack.c.h.bf16 %v1372_v19  ;;  %v1404_v49 = vld [vmem:[#allocation5 + $0x70] sm:$0xff]   ;;  %v1408_v54 = vld [vmem:[#allocation5 + $0x78] sm:$0xff]   ;;  %v1412_v58 = vld [vmem:[#allocation5 + $0x80] sm:$0xff]  }
  0x62   :  { %v845_v39 = vunpack.c.l.bf16 %v1378_v24  ;;  %v846_v40 = vunpack.c.h.bf16 %v1378_v24  ;;  %v849_v41 = vunpack.c.l.bf16 %v1380_v25  ;;  %v850_v45 = vunpack.c.h.bf16 %v1380_v25  ;;  %v1414_v59 = vld [vmem:[#allocation5 + $0x88] sm:$0xff]   ;;  %v1419_v63 = vld [vmem:[#allocation5 + $0x90] sm:$0xff]   ;;  %v1421_v0 = vld [vmem:[#allocation5 + $0x98] sm:$0xff]  }
  0x63   :  { %v853_v46 = vunpack.c.l.bf16 %v1386_v30  ;;  %v1426_v4 = vld [vmem:[#allocation5 + $0xa0] sm:$0xff]   ;;  %v1428_v5 = vld [vmem:[#allocation5 + $0xa8] sm:$0xff]   ;;  %v1450_v1 = vld [vmem:[#allocation5 + $0xd0] sm:$0xff]   ;;  %v1980_v24 = vunpack.c.l.bf16 %v1392_v36  ;;  %v1982_v25 = vunpack.c.l.bf16 %v1397_v42  ;;  %vm481_vm2 = vcmask 1043459  }
  0x64   :  { %v1442_v3 = vld [vmem:[#allocation5 + $0xc0] sm:$0xff]   ;;  %v1444_v6 = vld [vmem:[#allocation5 + $0xc8] sm:$0xff]   ;;  %v1466_v57 = vld [vmem:[#allocation5 + $0xf0] sm:$0xff]   ;;  %v2002_v60 = vunpack.c.l.bf16 %v1426_v4  ;;  %v2004_v2 = vunpack.c.l.bf16 %v1428_v5  ;;  %vm483_vm3 = vcmask 1044484   ;;  %vm485_vm4 = vcmask 1045509  }
  0x65   :  { %v1458_v61 = vld [vmem:[#allocation5 + $0xe0] sm:$0xff]   ;;  %vm487_vm5 = vcmask 1046534   ;;  %vm489_vm6 = vcmask 1047559  }
  0x67   :  { %v1064_v31 = vpop.eup %1063 }
  0x68   :  { %v1066_v37 = vpop.eup %1065  ;;  %v111_v38 = vadd.f32 1.0, %v1064_v31  ;;  %v1460_v31 = vld [vmem:[#allocation5 + $0xe8] sm:$0xff]  }
  0x69   :  { %v1068_v43 = vpop.eup %1067  ;;  %v112_v44 = vadd.f32 1.0, %v1066_v37 }
  0x6a   :  { %v1070_v50 = vpop.eup %1069  ;;  %v113_v51 = vadd.f32 1.0, %v1068_v43  ;;  %1071 = vrcp.f32 %v111_v38  ;;  %v1434_v38 = vld [vmem:[#allocation5 + $0xb0] sm:$0xff]   ;;  %v1436_v43 = vld [vmem:[#allocation5 + $0xb8] sm:$0xff]  }
  0x6b   :  { %v114_v55 = vadd.f32 1.0, %v1070_v50  ;;  %1073 = vrcp.f32 %v112_v44  ;;  %v1452_v44 = vld [vmem:[#allocation5 + $0xd8] sm:$0xff]  }
  0x6c   :  { %1075 = vrcp.f32 %v113_v51  ;;  %v1468_v51 = vld [vmem:[#allocation5 + $0xf8] sm:$0xff]  }
  0x6d   :  { %1077 = vrcp.f32 %v114_v55 }
  0x74   :  { %v1474_v53 = vpop.eup %1071 }
  0x75   :  { %v1480_v52 = vpop.eup %1073  ;;  %v253_v37 = vmul.f32 %v1474_v53, %v813_v14  ;;  %v257_v7 = vmul.f32 %v1474_v53, %v821_v20  ;;  %v261_v50 = vmul.f32 %v1474_v53, %v829_v26  ;;  %v265_v55 = vmul.f32 %v1474_v53, %v837_v32 }
  0x76   :  { %v1486_v47 = vpop.eup %1075  ;;  %v254_v56 = vmul.f32 %v1480_v52, %v814_v15  ;;  %v258_v14 = vmul.f32 %v1480_v52, %v822_v21  ;;  %v262_v20 = vmul.f32 %v1480_v52, %v830_v27  ;;  %v266_v26 = vmul.f32 %v1480_v52, %v838_v33 }
  0x77   :  { %v1500_v62 = vpop.eup %1077  ;;  %v255_v32 = vmul.f32 %v1486_v47, %v817_v16  ;;  %v259_v8 = vmul.f32 %v1486_v47, %v825_v22  ;;  %v263_v10 = vmul.f32 %v1486_v47, %v833_v28  ;;  %v267_v12 = vmul.f32 %v1486_v47, %v841_v34 }
  0x78   :  { %v1529_v15 = vmul.f32 %v1500_v62, %v818_v17  ;;  %v1534_v16 = vmul.f32 %v1500_v62, %v826_v23  ;;  %v1539_v18 = vmul.f32 %v1500_v62, %v834_v29  ;;  %v1544_v21 = vmul.f32 %v1500_v62, %v842_v35 }
  0x79   :  { %v269_v9 = vmul.f32 %v1474_v53, %v845_v39  ;;  %v270_v11 = vmul.f32 %v1480_v52, %v846_v40  ;;  %v271_v13 = vmul.f32 %v1486_v47, %v849_v41  ;;  %v272_v17 = vmul.f32 %v1500_v62, %v850_v45 }
  0x7a   :  { %v273_v19 = vmul.f32 %v1474_v53, %v853_v46  ;;  %v1979_v22 = vunpack.c.h.bf16 %v1386_v30  ;;  %v275_v27 = vmul.f32 %v1486_v47, %v1980_v24  ;;  %v1981_v28 = vunpack.c.h.bf16 %v1392_v36 }
  0x7b   :  { %v277_v33 = vmul.f32 %v1474_v53, %v1982_v25  ;;  %v1983_v34 = vunpack.c.h.bf16 %v1397_v42  ;;  %v1984_v30 = vunpack.c.l.bf16 %v1402_v48  ;;  %v1985_v40 = vunpack.c.h.bf16 %v1402_v48 }
  0x7c   :  { %v274_v23 = vmul.f32 %v1480_v52, %v1979_v22  ;;  %v276_v29 = vmul.f32 %v1500_v62, %v1981_v28  ;;  %v1986_v36 = vunpack.c.l.bf16 %v1404_v49  ;;  %v1987_v46 = vunpack.c.h.bf16 %v1404_v49 }
  0x7d   :  { %v278_v35 = vmul.f32 %v1480_v52, %v1983_v34  ;;  %v279_v39 = vmul.f32 %v1486_v47, %v1984_v30  ;;  %v280_v41 = vmul.f32 %v1500_v62, %v1985_v40  ;;  %v1988_v42 = vunpack.c.l.bf16 %v1408_v54 }
  0x7e   :  { %v281_v45 = vmul.f32 %v1474_v53, %v1986_v36  ;;  %v282_v22 = vmul.f32 %v1480_v52, %v1987_v46  ;;  %v1989_v28 = vunpack.c.h.bf16 %v1408_v54  ;;  %v1990_v48 = vunpack.c.l.bf16 %v1412_v58 }
  0x7f   :  { %v283_v24 = vmul.f32 %v1486_v47, %v1988_v42  ;;  %v1991_v30 = vunpack.c.h.bf16 %v1412_v58  ;;  %v1992_v49 = vunpack.c.l.bf16 %v1414_v59  ;;  %v1994_v46 = vunpack.c.h.bf16 %v1414_v59 }
  0x80   :  { %v284_v25 = vmul.f32 %v1500_v62, %v1989_v28  ;;  %v1597_v34 = vmul.f32 %v1474_v53, %v1990_v48  ;;  %v1996_v42 = vunpack.c.l.bf16 %v1419_v63  ;;  %v1997_v58 = vunpack.c.h.bf16 %v1419_v63 }
  0x81   :  { %v1602_v40 = vmul.f32 %v1480_v52, %v1991_v30  ;;  %v1607_v36 = vmul.f32 %v1486_v47, %v1992_v49  ;;  %v1612_v54 = vmul.f32 %v1500_v62, %v1994_v46  ;;  %v1998_v30 = vunpack.c.l.bf16 %v1421_v0 }
  0x82   :  { %v1617_v28 = vmul.f32 %v1474_v53, %v1996_v42  ;;  %v1622_v48 = vmul.f32 %v1480_v52, %v1997_v58  ;;  %v2000_v59 = vunpack.c.h.bf16 %v1421_v0  ;;  %v1637_v42 = vmul.f32 %v1474_v53, %v2002_v60 }
  0x83   :  { %1993 = vst [vmem:[#allocation16_spill] sm:$0xff] %v1607_v36  ;;  %1995 = vst [vmem:[#allocation17_spill] sm:$0xff] %v1612_v54  ;;  %v1627_v49 = vmul.f32 %v1486_v47, %v1998_v30  ;;  %v2003_v63 = vunpack.c.h.bf16 %v1426_v4  ;;  %v1647_v30 = vmul.f32 %v1486_v47, %v2004_v2  ;;  %v2006_v0 = vunpack.c.h.bf16 %v1428_v5 }
  0x84   :  { %v1632_v46 = vmul.f32 %v1500_v62, %v2000_v59  ;;  %v2009_v4 = vunpack.c.h.bf16 %v1434_v38  ;;  %v2011_v54 = vunpack.c.l.bf16 %v1436_v43  ;;  %v2013_v5 = vunpack.c.h.bf16 %v1436_v43 }
  0x85   :  { %1999 = vst [vmem:[#allocation18_spill] sm:$0xff] %v1627_v49  ;;  %v1642_v58 = vmul.f32 %v1480_v52, %v2003_v63  ;;  %2005 = vst [vmem:[#allocation20_spill] sm:$0xff] %v1647_v30  ;;  %v1652_v59 = vmul.f32 %v1500_v62, %v2006_v0  ;;  %v2019_v30 = vunpack.c.l.bf16 %v1444_v6  ;;  %v2021_v43 = vunpack.c.h.bf16 %v1444_v6 }
  0x86   :  { %2001 = vst [vmem:[#allocation19_spill] sm:$0xff] %v1632_v46  ;;  %v2008_v46 = vunpack.c.l.bf16 %v1434_v38  ;;  %v1662_v63 = vmul.f32 %v1480_v52, %v2009_v4  ;;  %v1667_v2 = vmul.f32 %v1486_v47, %v2011_v54  ;;  %v1672_v0 = vmul.f32 %v1500_v62, %v2013_v5 }
  0x87   :  { %2007 = vst [vmem:[#allocation21_spill] sm:$0xff] %v1652_v59  ;;  %v2015_v59 = vunpack.c.l.bf16 %v1442_v3  ;;  %v2017_v38 = vunpack.c.h.bf16 %v1442_v3  ;;  %v1687_v54 = vmul.f32 %v1486_v47, %v2019_v30  ;;  %v1692_v5 = vmul.f32 %v1500_v62, %v2021_v43 }
  0x88   :  { %v1657_v60 = vmul.f32 %v1474_v53, %v2008_v46  ;;  %2010 = vst [vmem:[#allocation22_spill] sm:$0xff] %v1662_v63  ;;  %2012 = vst [vmem:[#allocation23_spill] sm:$0xff] %v1667_v2  ;;  %v2025_v3 = vunpack.c.h.bf16 %v1450_v1  ;;  %v2027_v2 = vunpack.c.l.bf16 %v1452_v44  ;;  %v2029_v6 = vunpack.c.h.bf16 %v1452_v44 }
  0x89   :  { %2014 = vst [vmem:[#allocation24_spill] sm:$0xff] %v1672_v0  ;;  %v1677_v46 = vmul.f32 %v1474_v53, %v2015_v59  ;;  %v1682_v4 = vmul.f32 %v1480_v52, %v2017_v38  ;;  %2020 = vst [vmem:[#allocation27_spill] sm:$0xff] %v1687_v54  ;;  %v2023_v0 = vunpack.c.l.bf16 %v1450_v1  ;;  %v2033_v1 = vunpack.c.h.bf16 %v1458_v61 }
  0x8a   :  { %2022 = vst [vmem:[#allocation28_spill] sm:$0xff] %v1692_v5  ;;  %v1702_v38 = vmul.f32 %v1480_v52, %v2025_v3  ;;  %v1707_v30 = vmul.f32 %v1486_v47, %v2027_v2  ;;  %v1712_v43 = vmul.f32 %v1500_v62, %v2029_v6  ;;  %v2031_v5 = vunpack.c.l.bf16 %v1458_v61 }
  0x8b   :  { %2016 = vst [vmem:[#allocation25_spill] sm:$0xff] %v1677_v46  ;;  %2018 = vst [vmem:[#allocation26_spill] sm:$0xff] %v1682_v4  ;;  %v1697_v59 = vmul.f32 %v1474_v53, %v2023_v0  ;;  %v1722_v3 = vmul.f32 %v1480_v52, %v2033_v1  ;;  %v2035_v54 = vunpack.c.l.bf16 %v1460_v31  ;;  %v2037_v44 = vunpack.c.h.bf16 %v1460_v31 }
  0x8c   :  { %2026 = vst [vmem:[#allocation30_spill] sm:$0xff] %v1702_v38  ;;  %2028 = vst [vmem:[#allocation31_spill] sm:$0xff] %v1707_v30  ;;  %v1717_v0 = vmul.f32 %v1474_v53, %v2031_v5  ;;  %v326_v30 = vadd.f32 %v258_v14, %v257_v7  ;;  %v335_v49 = vadd.f32 %v262_v20, %v261_v50 }
  0x8d   :  { %2024 = vst [vmem:[#allocation29_spill] sm:$0xff] %v1697_v59  ;;  %2030 = vst [vmem:[#allocation32_spill] sm:$0xff] %v1712_v43  ;;  %v1727_v2 = vmul.f32 %v1486_v47, %v2035_v54  ;;  %v1732_v6 = vmul.f32 %v1500_v62, %v2037_v44  ;;  %v317_v43 = vadd.f32 %v254_v56, %v253_v37 }
  0x8e   :  { %2032 = vst [vmem:[#allocation33_spill] sm:$0xff] %v1717_v0  ;;  %2034 = vst [vmem:[#allocation34_spill] sm:$0xff] %v1722_v3  ;;  %v344_v5 = vadd.f32 %v266_v26, %v265_v55  ;;  %v353_v36 = vadd.f32 %v270_v11, %v269_v9  ;;  %v362_v0 = vadd.f32 %v274_v23, %v273_v19 }
  0x8f   :  { %2036 = vst [vmem:[#allocation35_spill] sm:$0xff] %v1727_v2  ;;  %v371_v61 = vadd.f32 %v278_v35, %v277_v33  ;;  %v380_v38 = vadd.f32 %v282_v22, %v281_v45  ;;  %v318_v1 = vadd.f32 %v317_v43, %v255_v32  ;;  %v327_v3 = vadd.f32 %v326_v30, %v259_v8 }
  0x90   :  { %v336_v59 = vadd.f32 %v335_v49, %v263_v10  ;;  %v345_v4 = vadd.f32 %v344_v5, %v267_v12  ;;  %v354_v46 = vadd.f32 %v353_v36, %v271_v13  ;;  %v363_v54 = vadd.f32 %v362_v0, %v275_v27 }
  0x91   :  { %v372_v2 = vadd.f32 %v371_v61, %v279_v39  ;;  %v381_v63 = vadd.f32 %v380_v38, %v283_v24  ;;  %v319_v31 = vadd.f32 %v318_v1, %v1529_v15  ;;  %v328_v44 = vadd.f32 %v327_v3, %v1534_v16 }
  0x92   :  { %v337_v56 = vadd.f32 %v336_v59, %v1539_v18  ;;  %v346_v7 = vadd.f32 %v345_v4, %v1544_v21  ;;  %v355_v37 = vadd.f32 %v354_v46, %v272_v17  ;;  %v364_v50 = vadd.f32 %v363_v54, %v276_v29 }
  0x93   :  { %v373_v55 = vadd.f32 %v372_v2, %v280_v41  ;;  %v382_v14 = vadd.f32 %v381_v63, %v284_v25  ;;  %v320_v20 = vrot.slane %v319_v31, 4  ;;  %v329_v26 = vrot.slane %v328_v44, 4 }
  0x94   :  { %v338_v32 = vrot.slane %v337_v56, 4  ;;  %v347_v8 = vrot.slane %v346_v7, 4  ;;  %v356_v10 = vrot.slane %v355_v37, 4  ;;  %v365_v12 = vrot.slane %v364_v50, 4 }
  0x95   :  { %v374_v9 = vrot.slane %v373_v55, 4  ;;  %v383_v11 = vrot.slane %v382_v14, 4  ;;  %v321_v13 = vadd.f32 %v320_v20, %v319_v31  ;;  %v330_v15 = vadd.f32 %v329_v26, %v328_v44  ;;  %v2043_v26 = vld [vmem:[#allocation25_spill] sm:$0xff] }
  0x96   :  { %v339_v19 = vadd.f32 %v338_v32, %v337_v56  ;;  %v348_v16 = vadd.f32 %v347_v8, %v346_v7  ;;  %v357_v23 = vadd.f32 %v356_v10, %v355_v37  ;;  %v366_v18 = vadd.f32 %v365_v12, %v364_v50  ;;  %v2044_v32 = vld [vmem:[#allocation26_spill] sm:$0xff]  ;;  %v2045_v10 = vld [vmem:[#allocation29_spill] sm:$0xff] }
  0x97   :  { %v375_v27 = vadd.f32 %v374_v9, %v373_v55  ;;  %v384_v21 = vadd.f32 %v383_v11, %v382_v14  ;;  %v322_v17 = vrot.slane %v321_v13, 2  ;;  %v331_v29 = vrot.slane %v330_v15, 2  ;;  %v2042_v14 = vld [vmem:[#allocation22_spill] sm:$0xff]  ;;  %v2047_v11 = vld [vmem:[#allocation33_spill] sm:$0xff] }
  0x98   :  { %v340_v33 = vrot.slane %v339_v19, 2  ;;  %v349_v35 = vrot.slane %v348_v16, 2  ;;  %v358_v39 = vrot.slane %v357_v23, 2  ;;  %v367_v41 = vrot.slane %v366_v18, 2  ;;  %v2046_v12 = vld [vmem:[#allocation30_spill] sm:$0xff] }
  0x99   :  { %v376_v45 = vrot.slane %v375_v27, 2  ;;  %v385_v22 = vrot.slane %v384_v21, 2  ;;  %v323_v24 = vadd.f32 %v322_v17, %v321_v13  ;;  %v332_v25 = vadd.f32 %v331_v29, %v330_v15  ;;  %v2048_v13 = vld [vmem:[#allocation34_spill] sm:$0xff]  ;;  %v2055_v17 = vld [vmem:[#allocation35_spill] sm:$0xff] }
  0x9a   :  { %v341_v36 = vadd.f32 %v340_v33, %v339_v19  ;;  %v350_v49 = vadd.f32 %v349_v35, %v348_v16  ;;  %v1738_v63 = vadd.f32 %v358_v39, %v357_v23  ;;  %v1740_v46 = vadd.f32 %v367_v41, %v366_v18  ;;  %v2050_v16 = vld [vmem:[#allocation18_spill] sm:$0xff]  ;;  %v2053_v18 = vld [vmem:[#allocation27_spill] sm:$0xff]  ;;  %v2056_v35 = vld [vmem:[#allocation17_spill] sm:$0xff] }
  0x9b   :  { %v1742_v4 = vadd.f32 %v376_v45, %v375_v27  ;;  %v1744_v59 = vadd.f32 %v385_v22, %v384_v21  ;;  %v324_v38 = vrot.slane %v323_v24, 1  ;;  %v333_v30 = vrot.slane %v332_v25, 1  ;;  %v2054_v27 = vld [vmem:[#allocation31_spill] sm:$0xff]  ;;  %v2058_v22 = vld [vmem:[#allocation21_spill] sm:$0xff] }
  0x9c   :  { %v342_v43 = vrot.slane %v341_v36, 1  ;;  %v351_v0 = vrot.slane %v350_v49, 1  ;;  %v2038_v3 = vunpack.c.l.bf16 %v1466_v57  ;;  %v2039_v5 = vunpack.c.h.bf16 %v1466_v57  ;;  %v2057_v41 = vld [vmem:[#allocation19_spill] sm:$0xff] }
  0x9d   :  { %v2040_v1 = vunpack.c.l.bf16 %v1468_v51  ;;  %v2041_v31 = vunpack.c.h.bf16 %v1468_v51  ;;  %v360_v56 = vrot.slane %v1738_v63, 1  ;;  %v369_v7 = vrot.slane %v1740_v46, 1 }
  0x9e   :  { %v313_v2 = vmul.f32 %v1474_v53, %v2038_v3  ;;  %v314_v61 = vmul.f32 %v1480_v52, %v2039_v5  ;;  %v378_v37 = vrot.slane %v1742_v4, 1  ;;  %v387_v53 = vrot.slane %v1744_v59, 1 }
  0x9f   :  { %v315_v54 = vmul.f32 %v1486_v47, %v2040_v1  ;;  %v316_v44 = vmul.f32 %v1500_v62, %v2041_v31  ;;  %v1762_v50 = vadd.f32 %v324_v38, %v323_v24  ;;  %v1764_v57 = vadd.f32 %v333_v30, %v332_v25  ;;  %v2059_v25 = vld [vmem:[#allocation24_spill] sm:$0xff] }
  0xa0   :  { %v1766_v52 = vadd.f32 %v342_v43, %v341_v36  ;;  %v1768_v55 = vadd.f32 %v351_v0, %v350_v49  ;;  %v389_v47 = vadd.f32 %v1602_v40, %v1597_v34  ;;  %v398_v62 = vadd.f32 %v1622_v48, %v1617_v28  ;;  %v2049_v34 = vld [vmem:[#allocation16_spill] sm:$0xff] }
  0xa1   :  { %v407_v51 = vadd.f32 %v1642_v58, %v1637_v42  ;;  %v416_v20 = vadd.f32 %v2042_v14, %v1657_v60  ;;  %v425_v8 = vadd.f32 %v2044_v32, %v2043_v26  ;;  %v434_v9 = vadd.f32 %v2046_v12, %v2045_v10  ;;  %v2051_v48 = vld [vmem:[#allocation20_spill] sm:$0xff]  ;;  %v2052_v42 = vld [vmem:[#allocation23_spill] sm:$0xff] }
  0xa2   :  { %v443_v15 = vadd.f32 %v2048_v13, %v2047_v11  ;;  %v452_v19 = vadd.f32 %v314_v61, %v313_v2  ;;  %v390_v40 = vadd.f32 %v389_v47, %v2049_v34  ;;  %v399_v28 = vadd.f32 %v398_v62, %v2050_v16  ;;  %v2060_v49 = vld [vmem:[#allocation28_spill] sm:$0xff] }
  0xa3   :  { %v408_v23 = vadd.f32 %v407_v51, %v2051_v48  ;;  %v417_v58 = vadd.f32 %v416_v20, %v2052_v42  ;;  %v426_v60 = vadd.f32 %v425_v8, %v2053_v18  ;;  %v435_v21 = vadd.f32 %v434_v9, %v2054_v27  ;;  %v2061_v30 = vld [vmem:[#allocation32_spill] sm:$0xff] }
  0xa4   :  { %v444_v29 = vadd.f32 %v443_v15, %v2055_v17  ;;  %v453_v33 = vadd.f32 %v452_v19, %v315_v54  ;;  %v391_v39 = vadd.f32 %v390_v40, %v2056_v35  ;;  %v400_v45 = vadd.f32 %v399_v28, %v2057_v41 }
  0xa5   :  { %v409_v24 = vadd.f32 %v408_v23, %v2058_v22  ;;  %v418_v36 = vadd.f32 %v417_v58, %v2059_v25  ;;  %v427_v38 = vadd.f32 %v426_v60, %v2060_v49  ;;  %v436_v43 = vadd.f32 %v435_v21, %v2061_v30 }
  0xa6   :  { %v445_v0 = vadd.f32 %v444_v29, %v1732_v6  ;;  %v454_v3 = vadd.f32 %v453_v33, %v316_v44  ;;  %v392_v2 = vrot.slane %v391_v39, 4  ;;  %v401_v5 = vrot.slane %v400_v45, 4 }
  0xa7   :  { %v410_v61 = vrot.slane %v409_v24, 4  ;;  %v419_v1 = vrot.slane %v418_v36, 4  ;;  %v428_v54 = vrot.slane %v427_v38, 4  ;;  %v437_v31 = vrot.slane %v436_v43, 4 }
  0xa8   :  { %v446_v47 = vrot.slane %v445_v0, 4  ;;  %v455_v62 = vrot.slane %v454_v3, 4  ;;  %v393_v51 = vadd.f32 %v392_v2, %v391_v39  ;;  %v402_v14 = vadd.f32 %v401_v5, %v400_v45  ;;  %v124_v5 = vld [vmem:[#allocation7 + $0x8] sm:$0xff] }
  0xa9   :  { %v411_v20 = vadd.f32 %v410_v61, %v409_v24  ;;  %v420_v26 = vadd.f32 %v419_v1, %v418_v36  ;;  %v429_v32 = vadd.f32 %v428_v54, %v427_v38  ;;  %v438_v8 = vadd.f32 %v437_v31, %v436_v43 }
  0xaa   :  { %v447_v10 = vadd.f32 %v446_v47, %v445_v0  ;;  %v456_v12 = vadd.f32 %v455_v62, %v454_v3  ;;  %v394_v6 = vrot.slane %v393_v51, 2  ;;  %v403_v44 = vrot.slane %v402_v14, 2 }
  0xab   :  { %v412_v9 = vrot.slane %v411_v20, 2  ;;  %v421_v11 = vrot.slane %v420_v26, 2  ;;  %v430_v13 = vrot.slane %v429_v32, 2  ;;  %v439_v15 = vrot.slane %v438_v8, 2 }
  0xac   :  { %v448_v19 = vrot.slane %v447_v10, 2  ;;  %v457_v34 = vrot.slane %v456_v12, 2  ;;  %v395_v40 = vadd.f32 %v394_v6, %v393_v51  ;;  %v404_v16 = vadd.f32 %v403_v44, %v402_v14  ;;  %v1041_v6 = vld [vmem:[#allocation8 + $0x20] sm:$0xff]   ;;  %v1042_v44 = vld [vmem:[#allocation8 + $0x28] sm:$0xff]  }
  0xad   :  { %v413_v28 = vadd.f32 %v412_v9, %v411_v20  ;;  %v422_v48 = vadd.f32 %v421_v11, %v420_v26  ;;  %v431_v23 = vadd.f32 %v430_v13, %v429_v32  ;;  %v440_v42 = vadd.f32 %v439_v15, %v438_v8  ;;  %v940_v32 = vld [vmem:[#allocation8] sm:$0xff]   ;;  %v1038_v8 = vld [vmem:[#allocation8 + $0x8] sm:$0xff]  }
  0xae   :  { %v449_v58 = vadd.f32 %v448_v19, %v447_v10  ;;  %v458_v18 = vadd.f32 %v457_v34, %v456_v12  ;;  %v396_v60 = vrot.slane %v395_v40, 1  ;;  %v405_v27 = vrot.slane %v404_v16, 1  ;;  %v1039_v10 = vld [vmem:[#allocation8 + $0x10] sm:$0xff]   ;;  %v1040_v12 = vld [vmem:[#allocation8 + $0x18] sm:$0xff]  }
  0xaf   :  { %v414_v21 = vrot.slane %v413_v28, 1  ;;  %v423_v17 = vrot.slane %v422_v48, 1  ;;  %v432_v29 = vrot.slane %v431_v23, 1  ;;  %v441_v33 = vrot.slane %v440_v42, 1  ;;  %v1043_v19 = vld [vmem:[#allocation8 + $0x30] sm:$0xff]   ;;  %v1044_v34 = vld [vmem:[#allocation8 + $0x38] sm:$0xff]  }
  0xb0   :  { %v450_v35 = vrot.slane %v449_v58, 1  ;;  %v459_v39 = vrot.slane %v458_v18, 1  ;;  %v397_v41 = vadd.f32 %v396_v60, %v395_v40  ;;  %v406_v45 = vadd.f32 %v405_v27, %v404_v16 }
  0xb1   :  { %v415_v22 = vadd.f32 %v414_v21, %v413_v28  ;;  %v424_v24 = vadd.f32 %v423_v17, %v422_v48  ;;  %v361_v25 = vadd.f32 %v360_v56, %v1738_v63  ;;  %v433_v36 = vadd.f32 %v432_v29, %v431_v23  ;;  %v1045_v23 = vld [vmem:[#allocation8 + $0x40] sm:$0xff]   ;;  %v1047_v21 = vld [vmem:[#allocation8 + $0x50] sm:$0xff]   ;;  %v1048_v17 = vld [vmem:[#allocation8 + $0x58] sm:$0xff]  }
  0xb2   :  { %v370_v49 = vadd.f32 %v369_v7, %v1740_v46  ;;  %v442_v38 = vadd.f32 %v441_v33, %v440_v42  ;;  %v478_v30 = vsel %vm477_vm0, %v1764_v57, %v1762_v50  ;;  %v491_v43 = vsel %vm477_vm0, %v406_v45, %v397_v41  ;;  %v1046_v42 = vld [vmem:[#allocation8 + $0x48] sm:$0xff]   ;;  %v1049_v41 = vld [vmem:[#allocation8 + $0x60] sm:$0xff]  }
  0xb3   :  { %v379_v0 = vadd.f32 %v378_v37, %v1742_v4  ;;  %v451_v3 = vadd.f32 %v450_v35, %v449_v58  ;;  %v480_v63 = vsel %vm479_vm1, %v1766_v52, %v478_v30  ;;  %v492_v56 = vsel %vm479_vm1, %v415_v22, %v491_v43  ;;  %v123_v37 = vld [vmem:[#allocation7] sm:$0xff]  ;;  %v1050_v45 = vld [vmem:[#allocation8 + $0x68] sm:$0xff]  }
  0xb4   :  { %v388_v46 = vadd.f32 %v387_v53, %v1744_v59  ;;  %v460_v7 = vadd.f32 %v459_v39, %v458_v18  ;;  %v482_v50 = vsel %vm481_vm2, %v1768_v55, %v480_v63  ;;  %v493_v57 = vsel %vm481_vm2, %v424_v24, %v492_v56 }
  0xb5   :  { %v484_v2 = vsel %vm483_vm3, %v361_v25, %v482_v50  ;;  %v494_v4 = vsel %vm483_vm3, %v433_v36, %v493_v57  ;;  %v941_v9 = vunpack.c.l.bf16 %v940_v32  ;;  %v942_v11 = vunpack.c.h.bf16 %v940_v32 }
  0xb6   :  { %v486_v52 = vsel %vm485_vm4, %v370_v49, %v484_v2  ;;  %v495_v61 = vsel %vm485_vm4, %v442_v38, %v494_v4  ;;  %v945_v13 = vunpack.c.l.bf16 %v1038_v8  ;;  %v946_v15 = vunpack.c.h.bf16 %v1038_v8  ;;  %v1828_v49 = vld [vmem:[#allocation8 + $0x70] sm:$0xff]   ;;  %v1830_v38 = vld [vmem:[#allocation8 + $0x78] sm:$0xff]  }
  0xb7   :  { %v488_v1 = vsel %vm487_vm5, %v379_v0, %v486_v52  ;;  %v496_v59 = vsel %vm487_vm5, %v451_v3, %v495_v61  ;;  %v949_v40 = vunpack.c.l.bf16 %v1039_v10  ;;  %v950_v16 = vunpack.c.h.bf16 %v1039_v10 }
  0xb8   :  { %v490_v53 = vsel %vm489_vm6, %v388_v46, %v488_v1  ;;  %v497_v55 = vsel %vm489_vm6, %v460_v7, %v496_v59  ;;  %v953_v28 = vunpack.c.l.bf16 %v1040_v12  ;;  %v954_v48 = vunpack.c.h.bf16 %v1040_v12 }
  0xb9   :  { %v500_v54 = vadd.f32 %v490_v53, %v123_v37  ;;  %v501_v31 = vadd.f32 %v497_v55, %v124_v5  ;;  %v957_v58 = vunpack.c.l.bf16 %v1041_v6  ;;  %v958_v18 = vunpack.c.h.bf16 %v1041_v6 }
  0xba   :  { %v961_v60 = vunpack.c.l.bf16 %v1042_v44  ;;  %v962_v27 = vunpack.c.h.bf16 %v1042_v44  ;;  %v965_v29 = vunpack.c.l.bf16 %v1043_v19  ;;  %v966_v33 = vunpack.c.h.bf16 %v1043_v19 }
  0xbb   :  { %v807_v47 = vmul.f32 -1.442695, %v500_v54  ;;  %v808_v62 = vmul.f32 -1.442695, %v501_v31  ;;  %v969_v35 = vunpack.c.l.bf16 %v1044_v34  ;;  %v970_v39 = vunpack.c.h.bf16 %v1044_v34 }
  0xbc   :  { %v973_v22 = vunpack.c.l.bf16 %v1045_v23  ;;  %v974_v24 = vunpack.c.h.bf16 %v1045_v23  ;;  %v977_v25 = vunpack.c.l.bf16 %v1046_v42  ;;  %v978_v36 = vunpack.c.h.bf16 %v1046_v42 }
  0xbd   :  { %1079 = vpow2.f32 %v807_v47  ;;  %v981_v30 = vunpack.c.l.bf16 %v1047_v21  ;;  %v982_v43 = vunpack.c.h.bf16 %v1047_v21  ;;  %v985_v0 = vunpack.c.l.bf16 %v1048_v17 }
  0xbe   :  { %1081 = vpow2.f32 %v808_v62  ;;  %v986_v3 = vunpack.c.h.bf16 %v1048_v17  ;;  %v989_v56 = vunpack.c.l.bf16 %v1049_v41  ;;  %v990_v46 = vunpack.c.h.bf16 %v1049_v41 }
  0xbf   :  { %v993_v7 = vunpack.c.l.bf16 %v1050_v45  ;;  %v994_v50 = vunpack.c.h.bf16 %v1050_v45  ;;  %v997_v2 = vunpack.c.l.bf16 %v1828_v49  ;;  %v998_v4 = vunpack.c.h.bf16 %v1828_v49 }
  0xc0   :  { %v1001_v37 = vunpack.c.l.bf16 %v1830_v38  ;;  %v1002_v5 = vunpack.c.h.bf16 %v1830_v38 }
  0xc7   :  { %v1080_v51 = vpop.eup %1079 }
  0xc8   :  { %v1082_v14 = vpop.eup %1081  ;;  %v508_v20 = vadd.f32 1.0, %v1080_v51 }
  0xc9   :  { %v509_v26 = vadd.f32 1.0, %v1082_v14 }
  0xca   :  { %1083 = vrcp.f32 %v508_v20 }
  0xcb   :  { %1085 = vrcp.f32 %v509_v26 }
  0xd4   :  { %v1832_v63 = vpop.eup %1083 }
  0xd5   :  { %v1834_v57 = vpop.eup %1085  ;;  %v580_v52 = vmul.f32 %v1832_v63, %v941_v9  ;;  %v582_v61 = vmul.f32 %v1832_v63, %v945_v13  ;;  %v584_v1 = vmul.f32 %v1832_v63, %v949_v40  ;;  %v586_v59 = vmul.f32 %v1832_v63, %v953_v28 }
  0xd6   :  { %v581_v53 = vmul.f32 %v1834_v57, %v942_v11  ;;  %v583_v55 = vmul.f32 %v1834_v57, %v946_v15  ;;  %v585_v54 = vmul.f32 %v1834_v57, %v950_v16  ;;  %v587_v31 = vmul.f32 %v1834_v57, %v954_v48 }
  0xd7   :  { %v588_v47 = vmul.f32 %v1832_v63, %v957_v58  ;;  %v589_v62 = vmul.f32 %v1834_v57, %v958_v18  ;;  %v590_v51 = vmul.f32 %v1832_v63, %v961_v60  ;;  %v591_v14 = vmul.f32 %v1834_v57, %v962_v27 }
  0xd8   :  { %v592_v20 = vmul.f32 %v1832_v63, %v965_v29  ;;  %v593_v26 = vmul.f32 %v1834_v57, %v966_v33  ;;  %v594_v32 = vmul.f32 %v1832_v63, %v969_v35  ;;  %v595_v8 = vmul.f32 %v1834_v57, %v970_v39 }
  0xd9   :  { %v1857_v10 = vmul.f32 %v1832_v63, %v973_v22  ;;  %v1860_v12 = vmul.f32 %v1834_v57, %v974_v24  ;;  %v1863_v6 = vmul.f32 %v1832_v63, %v977_v25  ;;  %v1866_v44 = vmul.f32 %v1834_v57, %v978_v36 }
  0xda   :  { %v1869_v9 = vmul.f32 %v1832_v63, %v981_v30  ;;  %v1872_v11 = vmul.f32 %v1834_v57, %v982_v43  ;;  %v1875_v13 = vmul.f32 %v1832_v63, %v985_v0  ;;  %v1878_v15 = vmul.f32 %v1834_v57, %v986_v3 }
  0xdb   :  { %v1881_v19 = vmul.f32 %v1832_v63, %v989_v56  ;;  %v1884_v34 = vmul.f32 %v1834_v57, %v990_v46  ;;  %v1887_v40 = vmul.f32 %v1832_v63, %v993_v7  ;;  %v607_v16 = vmul.f32 %v1834_v57, %v994_v50 }
  0xdc   :  { %v612_v28 = vadd.f32 %v581_v53, %v580_v52  ;;  %v619_v48 = vadd.f32 %v583_v55, %v582_v61  ;;  %v626_v23 = vadd.f32 %v585_v54, %v584_v1  ;;  %v633_v42 = vadd.f32 %v587_v31, %v586_v59 }
  0xdd   :  { %v640_v58 = vadd.f32 %v589_v62, %v588_v47  ;;  %v647_v18 = vadd.f32 %v591_v14, %v590_v51  ;;  %v654_v60 = vadd.f32 %v593_v26, %v592_v20  ;;  %v661_v27 = vadd.f32 %v595_v8, %v594_v32 }
  0xde   :  { %v613_v21 = vrot.slane %v612_v28, 4  ;;  %v620_v17 = vrot.slane %v619_v48, 4  ;;  %v627_v29 = vrot.slane %v626_v23, 4  ;;  %v634_v33 = vrot.slane %v633_v42, 4 }
  0xdf   :  { %v641_v35 = vrot.slane %v640_v58, 4  ;;  %v648_v39 = vrot.slane %v647_v18, 4  ;;  %v655_v41 = vrot.slane %v654_v60, 4  ;;  %v662_v45 = vrot.slane %v661_v27, 4 }
  0xe0   :  { %v614_v22 = vadd.f32 %v613_v21, %v612_v28  ;;  %v621_v24 = vadd.f32 %v620_v17, %v619_v48  ;;  %v628_v25 = vadd.f32 %v627_v29, %v626_v23  ;;  %v635_v36 = vadd.f32 %v634_v33, %v633_v42 }
  0xe1   :  { %v642_v30 = vadd.f32 %v641_v35, %v640_v58  ;;  %v649_v43 = vadd.f32 %v648_v39, %v647_v18  ;;  %v656_v0 = vadd.f32 %v655_v41, %v654_v60  ;;  %v663_v3 = vadd.f32 %v662_v45, %v661_v27 }
  0xe2   :  { %v615_v56 = vrot.slane %v614_v22, 2  ;;  %v622_v46 = vrot.slane %v621_v24, 2  ;;  %v629_v7 = vrot.slane %v628_v25, 2  ;;  %v636_v50 = vrot.slane %v635_v36, 2 }
  0xe3   :  { %v643_v52 = vrot.slane %v642_v30, 2  ;;  %v650_v61 = vrot.slane %v649_v43, 2  ;;  %v657_v1 = vrot.slane %v656_v0, 2  ;;  %v664_v59 = vrot.slane %v663_v3, 2 }
  0xe4   :  { %v616_v53 = vadd.f32 %v615_v56, %v614_v22  ;;  %v623_v55 = vadd.f32 %v622_v46, %v621_v24  ;;  %v630_v54 = vadd.f32 %v629_v7, %v628_v25  ;;  %v637_v31 = vadd.f32 %v636_v50, %v635_v36 }
  0xe5   :  { %v1890_v47 = vadd.f32 %v643_v52, %v642_v30  ;;  %v1892_v62 = vadd.f32 %v650_v61, %v649_v43  ;;  %v1894_v51 = vadd.f32 %v657_v1, %v656_v0  ;;  %v1896_v14 = vadd.f32 %v664_v59, %v663_v3 }
  0xe6   :  { %v617_v20 = vrot.slane %v616_v53, 1  ;;  %v624_v26 = vrot.slane %v623_v55, 1  ;;  %v631_v32 = vrot.slane %v630_v54, 1  ;;  %v638_v8 = vrot.slane %v637_v31, 1 }
  0xe7   :  { %v608_v28 = vmul.f32 %v1832_v63, %v997_v2  ;;  %v609_v48 = vmul.f32 %v1834_v57, %v998_v4  ;;  %v610_v23 = vmul.f32 %v1832_v63, %v1001_v37  ;;  %v611_v42 = vmul.f32 %v1834_v57, %v1002_v5 }
  0xe8   :  { %v645_v58 = vrot.slane %v1890_v47, 1  ;;  %v652_v18 = vrot.slane %v1892_v62, 1  ;;  %v659_v60 = vrot.slane %v1894_v51, 1  ;;  %v666_v2 = vrot.slane %v1896_v14, 1 }
  0xe9   :  { %v618_v27 = vadd.f32 %v617_v20, %v616_v53  ;;  %v625_v49 = vadd.f32 %v624_v26, %v623_v55  ;;  %v1914_v21 = vadd.f32 %v631_v32, %v630_v54  ;;  %v1916_v4 = vadd.f32 %v638_v8, %v637_v31 }
  0xea   :  { %v668_v63 = vadd.f32 %v1860_v12, %v1857_v10  ;;  %v675_v38 = vadd.f32 %v1866_v44, %v1863_v6  ;;  %v682_v57 = vadd.f32 %v1872_v11, %v1869_v9  ;;  %v689_v37 = vadd.f32 %v1878_v15, %v1875_v13 }
  0xeb   :  { %v696_v5 = vadd.f32 %v1884_v34, %v1881_v19  ;;  %v703_v17 = vadd.f32 %v607_v16, %v1887_v40  ;;  %v710_v29 = vadd.f32 %v609_v48, %v608_v28  ;;  %v717_v33 = vadd.f32 %v611_v42, %v610_v23 }
  0xec   :  { %v669_v35 = vrot.slane %v668_v63, 4  ;;  %v676_v39 = vrot.slane %v675_v38, 4  ;;  %v683_v41 = vrot.slane %v682_v57, 4  ;;  %v690_v10 = vrot.slane %v689_v37, 4 }
  0xed   :  { %v697_v12 = vrot.slane %v696_v5, 4  ;;  %v704_v45 = vrot.slane %v703_v17, 4  ;;  %v711_v6 = vrot.slane %v710_v29, 4  ;;  %v718_v44 = vrot.slane %v717_v33, 4 }
  0xee   :  { %v670_v22 = vadd.f32 %v669_v35, %v668_v63  ;;  %v677_v9 = vadd.f32 %v676_v39, %v675_v38  ;;  %v684_v11 = vadd.f32 %v683_v41, %v682_v57  ;;  %v691_v24 = vadd.f32 %v690_v10, %v689_v37 }
  0xef   :  { %v698_v13 = vadd.f32 %v697_v12, %v696_v5  ;;  %v705_v15 = vadd.f32 %v704_v45, %v703_v17  ;;  %v712_v25 = vadd.f32 %v711_v6, %v710_v29  ;;  %v719_v19 = vadd.f32 %v718_v44, %v717_v33 }
  0xf0   :  { %v671_v34 = vrot.slane %v670_v22, 2  ;;  %v678_v40 = vrot.slane %v677_v9, 2  ;;  %v685_v16 = vrot.slane %v684_v11, 2  ;;  %v692_v36 = vrot.slane %v691_v24, 2 }
  0xf1   :  { %v699_v30 = vrot.slane %v698_v13, 2  ;;  %v706_v43 = vrot.slane %v705_v15, 2  ;;  %v713_v0 = vrot.slane %v712_v25, 2  ;;  %v720_v3 = vrot.slane %v719_v19, 2 }
  0xf2   :  { %v672_v56 = vadd.f32 %v671_v34, %v670_v22  ;;  %v679_v46 = vadd.f32 %v678_v40, %v677_v9  ;;  %v686_v7 = vadd.f32 %v685_v16, %v684_v11  ;;  %v693_v50 = vadd.f32 %v692_v36, %v691_v24 }
  0xf3   :  { %v700_v52 = vadd.f32 %v699_v30, %v698_v13  ;;  %v707_v61 = vadd.f32 %v706_v43, %v705_v15  ;;  %v714_v1 = vadd.f32 %v713_v0, %v712_v25  ;;  %v721_v59 = vadd.f32 %v720_v3, %v719_v19  ;;  %v1004_v13 = vld [vmem:[%s1976_s5] sm:$0xff]   ;;  %s1205_s5 = scalar_lea.vmem %s793_s17, 16 }
  0xf4   :  { %v673_v53 = vrot.slane %v672_v56, 1  ;;  %v680_v55 = vrot.slane %v679_v46, 1  ;;  %v687_v54 = vrot.slane %v686_v7, 1  ;;  %v694_v31 = vrot.slane %v693_v50, 1  ;;  %p1206_p12 = scmp.ne.s32.totalorder %s793_s17, %s1205_s5  ;;  %p1211_p0 = scmp.lt.s32.totalorder %s1209_s19, %s1205_s5 }
  0xf5   :  { %v701_v20 = vrot.slane %v700_v52, 1  ;;  %v708_v26 = vrot.slane %v707_v61, 1  ;;  %v715_v32 = vrot.slane %v714_v1, 1  ;;  %v722_v8 = vrot.slane %v721_v59, 1 }
  0xf6   :  { %v674_v28 = vadd.f32 %v673_v53, %v672_v56  ;;  %v681_v48 = vadd.f32 %v680_v55, %v679_v46  ;;  %v688_v23 = vadd.f32 %v687_v54, %v686_v7  ;;  %v695_v42 = vadd.f32 %v694_v31, %v693_v50  ;;  %v783_v46 = vld [vmem:[%s1977_s6] sm:$0x1]  ;;  %p1212_p1 = por %p1211_p0, %p1210_p13 }
  0xf7   :  { %v646_v63 = vadd.f32 %v645_v58, %v1890_v47  ;;  %v702_v38 = vadd.f32 %v701_v20, %v700_v52  ;;  %v653_v57 = vadd.f32 %v652_v18, %v1892_v62  ;;  %v709_v37 = vadd.f32 %v708_v26, %v707_v61 }
  0xf8   :  { %v740_v5 = vsel %vm477_vm0, %v625_v49, %v618_v27  ;;  %v747_v17 = vsel %vm477_vm0, %v681_v48, %v674_v28  ;;  %v660_v29 = vadd.f32 %v659_v60, %v1894_v51  ;;  %v716_v33 = vadd.f32 %v715_v32, %v714_v1  ;;  %v514_v60 = vld [vmem:[#allocation10] sm:$0xff]  ;;  %v515_v49 = vld [vmem:[#allocation10 + $0x8] sm:$0xff]  ;;  %p1213_p2 = pnand %p1212_p1, %p1206_p12 }
  0xf9   :  { %v741_v35 = vsel %vm479_vm1, %v1914_v21, %v740_v5  ;;  %v748_v39 = vsel %vm479_vm1, %v688_v23, %v747_v17  ;;  %v667_v47 = vadd.f32 %v666_v2, %v1896_v14  ;;  %v723_v62 = vadd.f32 %v722_v8, %v721_v59 }
  0xfa   :  { %v742_v58 = vsel %vm481_vm2, %v1916_v4, %v741_v35  ;;  %v749_v18 = vsel %vm481_vm2, %v695_v42, %v748_v39  ;;  %v1005_v15 = vunpack.c.l.bf16 %v1004_v13  ;;  %v1006_v25 = vunpack.c.h.bf16 %v1004_v13 }
  0xfb   :  { %v743_v27 = vsel %vm483_vm3, %v646_v63, %v742_v58  ;;  %v750_v51 = vsel %vm483_vm3, %v702_v38, %v749_v18 }
  0xfc   :  { %v744_v21 = vsel %vm485_vm4, %v653_v57, %v743_v27  ;;  %v751_v41 = vsel %vm485_vm4, %v709_v37, %v750_v51 }
  0xfd   :  { %v745_v10 = vsel %vm487_vm5, %v660_v29, %v744_v21  ;;  %v752_v14 = vsel %vm487_vm5, %v716_v33, %v751_v41 }
  0xfe   :  { %v746_v2 = vsel %vm489_vm6, %v667_v47, %v745_v10  ;;  %v753_v4 = vsel %vm489_vm6, %v723_v62, %v752_v14 }
  0xff   :  { %v756_v12 = vadd.f32 %v746_v2, %v514_v60  ;;  %v757_v45 = vadd.f32 %v753_v4, %v515_v49 }
 0x101   :  { %v809_v6 = vmul.f32 -1.442695, %v756_v12  ;;  %v810_v44 = vmul.f32 -1.442695, %v757_v45 }
 0x103   :  { %1087 = vpow2.f32 %v809_v6 }
 0x104   :  { %1089 = vpow2.f32 %v810_v44 }
 0x10d   :  { %v1088_v22 = vpop.eup %1087 }
 0x10e   :  { %v1090_v9 = vpop.eup %1089  ;;  %v764_v11 = vadd.f32 1.0, %v1088_v22 }
 0x10f   :  { %v765_v24 = vadd.f32 1.0, %v1090_v9 }
 0x110   :  { %1091 = vrcp.f32 %v764_v11 }
 0x111   :  { %1093 = vrcp.f32 %v765_v24 }
 0x11a   :  { %v1092_v19 = vpop.eup %1091 }
 0x11b   :  { %v1094_v34 = vpop.eup %1093  ;;  %v774_v40 = vmul.f32 %v1092_v19, %v1005_v15 }
 0x11c   :  { %v775_v16 = vmul.f32 %v1094_v34, %v1006_v25 }
 0x11e   :  { %v776_v36 = vadd.f32 %v775_v16, %v774_v40 }
 0x120   :  { %v777_v30 = vrot.slane %v776_v36, 4 }
 0x122   :  { %v778_v43 = vadd.f32 %v777_v30, %v776_v36 }
 0x124   :  { %v779_v0 = vrot.slane %v778_v43, 2 }
 0x126   :  { %v780_v3 = vadd.f32 %v779_v0, %v778_v43 }
 0x128   :  { %v781_v56 = vrot.slane %v780_v3, 1 }
 0x12a   :  { %v782_v7 = vadd.f32 %v781_v56, %v780_v3 }
 0x12c   :  { %v784_v50 = vadd.f32 %v783_v46, %v782_v7 }
 0x12e   :  { %785 = vst [vmem:[#allocation11] sm:$0x1] %v784_v50 }
 0x12f   :  { %1216 = shalt.err (!%p1213_p2)
}
 0x130   :  { %s1217_s22 = scalar_lea.hbm %s1978_s7, 16 }
 0x131   :  { %p1218_p3 = scmp.ne.s32.totalorder %s1978_s7, %s1217_s22  ;;  %p1221_p4 = scmp.lt.u32.totalorder %s1217_s22, %s1978_s7 }
 0x133   :  { %p1223_p5 = pnand %p1221_p4, %p1218_p3 }
 0x135   :  { %1226 = shalt.err (!%p1223_p5)
}
 0x136   :  { %795 = dma.vmem_to_hbm [thread:$0]  %s793_s17, 16, %s1978_s7, [#allocation4]  }
 0x137   :  { %1233 = dma.done.wait [#allocation4], 16  }
 0x138   :  { %1234 = vsyncadd [#allocation4], 4294967280 }
 0x139   :  { %799 = vsyncpa [#allocation3], 1 }
 0x13a   :  { %800 = vsyncpa [#allocation6], 1 }
 0x13b   :  { %801 = vsyncpa [#allocation9], 1 }
 0x13c   :  { %802 = vsyncpa [#allocation4], 1 }

</bundles_post_ra>
